<compile_context>
chip_gen: v6e
topology: v6e:2x2x1
jax: 0.10.0
libtpu: 0.0.40
codegen_flags: <defaults>
</compile_context>

<pallas_src>
import functools

import jax
import jax.numpy as jnp
from jax.experimental import pallas as pl
from jax.experimental.pallas import tpu as pltpu

EPS = 1e-5

_LANE = 128
_SUBLANE = 8
_VMEM_LIMIT = 32 * 1024 * 1024        # safe on v5e/v6e (128 MiB) and v7x (64 MiB)
_BLOCK_BUDGET = 20 * 1024 * 1024      # bytes allowed for double-buffered blocks


def _round_up(x, m):
    return (x + m - 1) // m * m


def _pick_tile_c(c_pad, n_rows, itemsize):
    """Largest multiple-of-128 channel tile that divides c_pad and whose
    double-buffered in+out blocks (plus an f32 working copy) fit the budget.
    Returns None if even a 128-lane full-N column slab is too big."""
    for cand in (2048, 1024, 512, 256, 128):
        if c_pad % cand != 0:
            continue
        # 2x input buffers + 2x output buffers (itemsize) + ~1x f32 temps
        if (4 * itemsize + 4) * n_rows * cand <= _BLOCK_BUDGET:
            return cand
    return None


# ---------------------------------------------------------------------------
# Single-pass kernel: whole N per channel tile (one independent BN per tile).
# ---------------------------------------------------------------------------
def _bn_fused_kernel(x_ref, gamma_ref, beta_ref, o_ref, *, inv_n, eps):
    x = x_ref[...].astype(jnp.float32)
    mean = jnp.sum(x, axis=0, keepdims=True) * inv_n
    xc = x - mean
    var = jnp.sum(xc * xc, axis=0, keepdims=True) * inv_n      # biased variance
    scale = jax.lax.rsqrt(var + eps) * gamma_ref[...]           # (1, TILE_C)
    shift = beta_ref[...] - mean * scale                        # (1, TILE_C)
    o_ref[...] = (x * scale + shift).astype(o_ref.dtype)


def _bn_single_pass(h_p, gamma2d, beta2d, n_true, tile_c, eps):
    n_rows, c_pad = h_p.shape
    itemsize = jnp.dtype(h_p.dtype).itemsize
    kernel = functools.partial(_bn_fused_kernel, inv_n=1.0 / n_true, eps=eps)
    return pl.pallas_call(
        kernel,
        out_shape=jax.ShapeDtypeStruct((n_rows, c_pad), h_p.dtype),
        grid_spec=pltpu.PrefetchScalarGridSpec(
            num_scalar_prefetch=0,
            grid=(c_pad // tile_c,),
            in_specs=[
                pl.BlockSpec((n_rows, tile_c), lambda j: (0, j)),
                pl.BlockSpec((1, tile_c), lambda j: (0, j)),
                pl.BlockSpec((1, tile_c), lambda j: (0, j)),
            ],
            out_specs=pl.BlockSpec((n_rows, tile_c), lambda j: (0, j)),
        ),
        compiler_params=pltpu.CompilerParams(
            dimension_semantics=("parallel",),
            vmem_limit_bytes=_VMEM_LIMIT,
        ),
        cost_estimate=pl.CostEstimate(
            flops=10 * n_rows * c_pad,
            transcendentals=c_pad,
            bytes_accessed=2 * n_rows * c_pad * itemsize + 12 * c_pad,
        ),
    )(h_p, gamma2d, beta2d)


# ---------------------------------------------------------------------------
# Two-pass kernels for large N: (1) accumulate per-channel sum / sum-of-squares
# over an N grid axis, (2) tiled normalize using the global statistics.
# ---------------------------------------------------------------------------
def _bn_stats_kernel(x_ref, stats_ref):
    @pl.when(pl.program_id(1) == 0)
    def _():
        stats_ref[...] = jnp.zeros_like(stats_ref)

    x = x_ref[...].astype(jnp.float32)
    partial_sums = jnp.concatenate(
        [jnp.sum(x, axis=0, keepdims=True),
         jnp.sum(x * x, axis=0, keepdims=True)],
        axis=0,
    )
    stats_ref[...] += partial_sums


def _bn_norm_kernel(x_ref, stats_ref, gamma_ref, beta_ref, o_ref, *, inv_n, eps):
    x = x_ref[...].astype(jnp.float32)
    mean = stats_ref[0:1, :] * inv_n
    var = jnp.maximum(stats_ref[1:2, :] * inv_n - mean * mean, 0.0)
    scale = jax.lax.rsqrt(var + eps) * gamma_ref[...]
    shift = beta_ref[...] - mean * scale
    o_ref[...] = (x * scale + shift).astype(o_ref.dtype)


def _bn_two_pass(h_p, gamma2d, beta2d, n_true, eps):
    orig_dtype = h_p.dtype
    itemsize = jnp.dtype(orig_dtype).itemsize
    _, c_pad = h_p.shape

    tile_n = min(512, _round_up(n_true, _SUBLANE))
    n_pad = _round_up(n_true, tile_n)
    if n_pad != n_true:
        # zero rows contribute nothing to sum / sumsq; we divide by the true N.
        h_p = jnp.pad(h_p, ((0, n_pad - n_true), (0, 0)))
    tile_c = next(c for c in (512, 256, 128) if c_pad % c == 0)

    grid = (c_pad // tile_c, n_pad // tile_n)

    stats = pl.pallas_call(
        _bn_stats_kernel,
        out_shape=jax.ShapeDtypeStruct((2, c_pad), jnp.float32),
        grid_spec=pltpu.PrefetchScalarGridSpec(
            num_scalar_prefetch=0,
            grid=grid,
            in_specs=[pl.BlockSpec((tile_n, tile_c), lambda j, i: (i, j))],
            out_specs=pl.BlockSpec((2, tile_c), lambda j, i: (0, j)),
        ),
        compiler_params=pltpu.CompilerParams(
            dimension_semantics=("parallel", "arbitrary"),
            vmem_limit_bytes=_VMEM_LIMIT,
        ),
        cost_estimate=pl.CostEstimate(
            flops=3 * n_pad * c_pad,
            transcendentals=0,
            bytes_accessed=n_pad * c_pad * itemsize + 8 * c_pad,
        ),
    )(h_p)

    out_p = pl.pallas_call(
        functools.partial(_bn_norm_kernel, inv_n=1.0 / n_true, eps=eps),
        out_shape=jax.ShapeDtypeStruct((n_pad, c_pad), orig_dtype),
        grid_spec=pltpu.PrefetchScalarGridSpec(
            num_scalar_prefetch=0,
            grid=grid,
            in_specs=[
                pl.BlockSpec((tile_n, tile_c), lambda j, i: (i, j)),
                pl.BlockSpec((2, tile_c), lambda j, i: (0, j)),
                pl.BlockSpec((1, tile_c), lambda j, i: (0, j)),
                pl.BlockSpec((1, tile_c), lambda j, i: (0, j)),
            ],
            out_specs=pl.BlockSpec((tile_n, tile_c), lambda j, i: (i, j)),
        ),
        compiler_params=pltpu.CompilerParams(
            dimension_semantics=("parallel", "parallel"),
            vmem_limit_bytes=_VMEM_LIMIT,
        ),
        cost_estimate=pl.CostEstimate(
            flops=2 * n_pad * c_pad,
            transcendentals=c_pad,
            bytes_accessed=2 * n_pad * c_pad * itemsize + 20 * c_pad,
        ),
    )(h_p, stats, gamma2d, beta2d)

    return out_p[:n_true]


# ---------------------------------------------------------------------------
# Wrapper: BatchNorm1dNode.forward(h)
# ---------------------------------------------------------------------------
def batchnorm1d_node(h, gamma, beta, eps=EPS):
    """Forward of BatchNorm1dNode (training-mode batch statistics). h: (N, C)."""
    N, C = h.shape
    c_pad = _round_up(C, _LANE)

    if c_pad != C:
        h_p = jnp.pad(h, ((0, 0), (0, c_pad - C)))
        gamma_p = jnp.pad(gamma, (0, c_pad - C), constant_values=1.0)
        beta_p = jnp.pad(beta, (0, c_pad - C))
    else:
        h_p, gamma_p, beta_p = h, gamma, beta

    gamma2d = gamma_p.reshape(1, c_pad).astype(jnp.float32)
    beta2d = beta_p.reshape(1, c_pad).astype(jnp.float32)

    tile_c = _pick_tile_c(c_pad, N, jnp.dtype(h.dtype).itemsize)
    if tile_c is not None:
        out_p = _bn_single_pass(h_p, gamma2d, beta2d, N, tile_c, eps)
    else:
        out_p = _bn_two_pass(h_p, gamma2d, beta2d, N, eps)

    return out_p[:, :C] if c_pad != C else out_p


def _reference(h, gamma, beta, eps=EPS):
    mean = jnp.mean(h, axis=0, keepdims=True)
    var = jnp.mean((h - mean) ** 2, axis=0, keepdims=True)  # biased
    return (h - mean) / jnp.sqrt(var + eps) * gamma[None, :] + beta[None, :]


if __name__ == "__main__":
    # Case 1: small node-feature batch, dim_in=32 (exercises the C->128 padding).
    key = jax.random.PRNGKey(0)
    N, C = 8, 32
    h = jax.random.normal(key, (N, C), dtype=jnp.float32)
    # nn.BatchNorm1d default parameter init: weight = 1, bias = 0
    gamma = jnp.ones((C,), dtype=jnp.float32)
    beta = jnp.zeros((C,), dtype=jnp.float32)

    out = jax.block_until_ready(batchnorm1d_node(h, gamma, beta))
    ref = _reference(h, gamma, beta)
    assert out.shape == (N, C)
    assert jnp.allclose(out, ref, atol=1e-5, rtol=1e-5), "mismatch vs reference (case 1)"

    # Case 2: multi-tile channel grid (C=384 -> 3 lane-dense tiles), affine params.
    k1, k2, k3 = jax.random.split(jax.random.PRNGKey(1), 3)
    N2, C2 = 64, 384
    h2 = jax.random.normal(k1, (N2, C2), dtype=jnp.float32)
    g2 = jax.random.normal(k2, (C2,), dtype=jnp.float32)
    b2 = jax.random.normal(k3, (C2,), dtype=jnp.float32)
    out2 = jax.block_until_ready(batchnorm1d_node(h2, g2, b2))
    assert jnp.allclose(out2, _reference(h2, g2, b2), atol=1e-4, rtol=1e-4), \
        "mismatch vs reference (case 2)"

    print("KERNEL_OK")
</pallas_src>

<mosaic_0001>
module attributes {stable_mosaic.version = 11 : i64} {
  func.func @_bn_fused_kernel(%arg0: i32, %arg1: memref<8x128xf32, #tpu.memory_space<vmem>>, %arg2: memref<1x128xf32, #tpu.memory_space<vmem>>, %arg3: memref<1x128xf32, #tpu.memory_space<vmem>>, %arg4: memref<8x128xf32, #tpu.memory_space<vmem>>) attributes {dimension_semantics = [#tpu.dimension_semantics<parallel>], iteration_bounds = array<i64: 1>, scalar_prefetch = 0 : i64, scratch_operands = 0 : i64, tpu.core_type = #tpu.core_type<tc>, window_params = [{transform_indices = @transform_0, window_bounds = array<i64: 8, 128>}, {transform_indices = @transform_1, window_bounds = array<i64: 1, 128>}, {transform_indices = @transform_2, window_bounds = array<i64: 1, 128>}, {transform_indices = @transform_3, window_bounds = array<i64: 8, 128>}]} {
    %c0 = arith.constant 0 : index
    %c0_0 = arith.constant 0 : index
    %0 = vector.load %arg1[%c0, %c0_0] : memref<8x128xf32, #tpu.memory_space<vmem>>, vector<8x128xf32>
    %cst = arith.constant dense<0.000000e+00> : vector<128xf32>
    %1 = vector.multi_reduction <add>, %0, %cst [0] : vector<8x128xf32> to vector<128xf32>
    %2 = vector.shape_cast %1 : vector<128xf32> to vector<1x128xf32>
    %cst_1 = arith.constant 1.250000e-01 : f32
    %3 = vector.broadcast %cst_1 : f32 to vector<1x128xf32>
    %4 = arith.mulf %2, %3 : vector<1x128xf32>
    %5 = vector.broadcast %4 : vector<1x128xf32> to vector<8x128xf32>
    %6 = arith.subf %0, %5 : vector<8x128xf32>
    %7 = arith.mulf %6, %6 : vector<8x128xf32>
    %cst_2 = arith.constant dense<0.000000e+00> : vector<128xf32>
    %8 = vector.multi_reduction <add>, %7, %cst_2 [0] : vector<8x128xf32> to vector<128xf32>
    %9 = vector.shape_cast %8 : vector<128xf32> to vector<1x128xf32>
    %cst_3 = arith.constant 1.250000e-01 : f32
    %10 = vector.broadcast %cst_3 : f32 to vector<1x128xf32>
    %11 = arith.mulf %9, %10 : vector<1x128xf32>
    %cst_4 = arith.constant 9.99999974E-6 : f32
    %12 = vector.broadcast %cst_4 : f32 to vector<1x128xf32>
    %13 = arith.addf %11, %12 : vector<1x128xf32>
    %14 = math.rsqrt %13 : vector<1x128xf32>
    %c0_5 = arith.constant 0 : index
    %c0_6 = arith.constant 0 : index
    %15 = vector.load %arg2[%c0_5, %c0_6] : memref<1x128xf32, #tpu.memory_space<vmem>>, vector<1x128xf32>
    %16 = arith.mulf %14, %15 : vector<1x128xf32>
    %c0_7 = arith.constant 0 : index
    %c0_8 = arith.constant 0 : index
    %17 = vector.load %arg3[%c0_7, %c0_8] : memref<1x128xf32, #tpu.memory_space<vmem>>, vector<1x128xf32>
    %18 = arith.mulf %4, %16 : vector<1x128xf32>
    %19 = arith.subf %17, %18 : vector<1x128xf32>
    %20 = vector.broadcast %16 : vector<1x128xf32> to vector<8x128xf32>
    %21 = arith.mulf %0, %20 : vector<8x128xf32>
    %22 = vector.broadcast %19 : vector<1x128xf32> to vector<8x128xf32>
    %23 = arith.addf %21, %22 : vector<8x128xf32>
    %c0_9 = arith.constant 0 : index
    %c0_10 = arith.constant 0 : index
    %24 = vector.load %arg4[%c0_9, %c0_10] : memref<8x128xf32, #tpu.memory_space<vmem>>, vector<8x128xf32>
    tpu.vector_store %arg4[%c0_9, %c0_10], %23 {strides = array<i32>} : memref<8x128xf32, #tpu.memory_space<vmem>>, vector<8x128xf32>,
    return
  }
  func.func @transform_0(%arg0: i32) -> (i32, i32) {
    %c0_i32 = arith.constant 0 : i32
    %c0_i32_0 = arith.constant 0 : i32
    return %c0_i32, %arg0 : i32, i32
  }
  func.func @transform_1(%arg0: i32) -> (i32, i32) {
    %c0_i32 = arith.constant 0 : i32
    %c0_i32_0 = arith.constant 0 : i32
    return %c0_i32, %arg0 : i32, i32
  }
  func.func @transform_2(%arg0: i32) -> (i32, i32) {
    %c0_i32 = arith.constant 0 : i32
    %c0_i32_0 = arith.constant 0 : i32
    return %c0_i32, %arg0 : i32, i32
  }
  func.func @transform_3(%arg0: i32) -> (i32, i32) {
    %c0_i32 = arith.constant 0 : i32
    %c0_i32_0 = arith.constant 0 : i32
    return %c0_i32, %arg0 : i32, i32
  }
}

</mosaic_0001>

<bundles_post_ra>
// kernel: tpu_custom_call.1
= control target key start
LH: loop header
LB: loop body
LE: loop exit
PB: predicated region body
PF: predicated region fallthrough
CT: control target
= control target key end

     0   :  { %8 = vsyncpa [#allocation3], 0  ;;  %s161_s0 = inlined_call_operand.hbm [shape: f32[8,128], index: 0, kind: input, shape index: {}]   ;;  %s162_s1 = inlined_call_operand.vmem [shape: f32[1,128], index: 1, kind: input, shape index: {}]   ;;  %s163_s2 = inlined_call_operand.vmem [shape: f32[1,128], index: 2, kind: input, shape index: {}]   ;;  %s164_s3 = inlined_call_operand.hbm [shape: f32[8,128], index: 3, kind: output, shape index: {}]  }
   0x1   :  { %9 = vsyncpa [#allocation4], 0  ;;  %s127_s12 = smov [#allocation2]  }
   0x2   :  { %s16_s13 = sshll.u32 %s127_s12, 4  ;;  %s17_s13 = int_to_ptr.vmem [resolvable:$true] %s16_s13 }
   0x3   :  { %s91_s14 = scalar_lea.vmem %s17_s13, 128  ;;  %p96_p1 = scmp.lt.s32.totalorder %s17_s13, %s17_s13 }
   0x4   :  { %p92_p0 = scmp.ne.s32.totalorder %s17_s13, %s91_s14  ;;  %p97_p2 = scmp.lt.s32.totalorder %s91_s14, %s91_s14 }
   0x6   :  { %p98_p3 = por %p97_p2, %p96_p1 }
   0x8   :  { %p99_p4 = pnand %p98_p3, %p92_p0 }
   0xa   :  { %102 = shalt.err (!%p99_p4)
}
   0xb   :  { %19 = dma.hbm_to_vmem [thread:$0]  %s161_s0, 128, %s17_s13, [#allocation3]  }
   0xc   :  { %123 = dma.done.wait [#allocation3], 128  }
   0xd   :  { %124 = vsyncadd [#allocation3], 4294967168  ;;  %v27_v0 = vld [vmem:[#allocation2] sm:$0xff]  ;;  %v51_v18 = vlaneseq  ;;  %s128_s20 = smov [#allocation5]  }
   0xe   :  { %v28_v1 = vrot.slane %v27_v0, 4  ;;  %v46_v20 = vld [vmem:[%s162_s1] sm:$0x1]  ;;  %s70_s21 = sshll.u32 %s128_s20, 4  ;;  %s71_s21 = int_to_ptr.vmem [resolvable:$true] %s70_s21 }
   0xf   :  { %v52_v19 = vshrl.u32 %v51_v18, 7  ;;  %v48_v24 = vld [vmem:[%s163_s2] sm:$0x1]  ;;  %s103_s22 = scalar_lea.vmem %s71_s21, 128  ;;  %p108_p6 = scmp.lt.s32.totalorder %s71_s21, %s71_s21 }
  0x10   :  { %v29_v2 = vadd.f32 %v28_v1, %v27_v0  ;;  %p104_p5 = scmp.ne.s32.totalorder %s71_s21, %s103_s22  ;;  %p109_p7 = scmp.lt.s32.totalorder %s103_s22, %s103_s22 }
  0x11   :  { %v53_v21 = vsub.s32 0, %v52_v19 }
  0x12   :  { %v30_v3 = vrot.slane %v29_v2, 2  ;;  %p110_p8 = por %p109_p7, %p108_p6 }
  0x14   :  { %v31_v4 = vadd.f32 %v30_v3, %v29_v2  ;;  %p111_p9 = pnand %p110_p8, %p104_p5 }
  0x16   :  { %v32_v5 = vrot.slane %v31_v4, 1 }
  0x18   :  { %v33_v6 = vadd.f32 %v32_v5, %v31_v4 }
  0x1a   :  { %v34_v7 = vmul.f32 0.125, %v33_v6 }
  0x1c   :  { %v35_v8 = vsub.f32 %v27_v0, %v34_v7 }
  0x1e   :  { %v36_v9 = vmul.f32 %v35_v8, %v35_v8 }
  0x20   :  { %v37_v10 = vrot.slane %v36_v9, 4 }
  0x22   :  { %v38_v11 = vadd.f32 %v37_v10, %v36_v9 }
  0x24   :  { %v39_v12 = vrot.slane %v38_v11, 2 }
  0x26   :  { %v40_v13 = vadd.f32 %v39_v12, %v38_v11 }
  0x28   :  { %v41_v14 = vrot.slane %v40_v13, 1 }
  0x2a   :  { %v42_v15 = vadd.f32 %v41_v14, %v40_v13 }
  0x2c   :  { %v43_v16 = vmul.f32 0.125, %v42_v15 }
  0x2e   :  { %v44_v17 = vadd.f32 1e-05, %v43_v16 }
  0x30   :  { %81 = vrsqrt.f32 %v44_v17 }
  0x3d   :  { %v82_v22 = vpop.eup %81 }
  0x3e   :  { %v47_v23 = vmul.f32 %v82_v22, %v46_v20 }
  0x40   :  { %v49_v25 = vmul.f32 %v47_v23, %v34_v7  ;;  %v54_v26 = vrot.slane %v47_v23, %v53_v21 }
  0x42   :  { %v50_v27 = vsub.f32 %v48_v24, %v49_v25  ;;  %v55_v28 = vmul.f32 %v54_v26, %v27_v0 }
  0x44   :  { %v60_v29 = vrot.slane %v50_v27, %v53_v21 }
  0x46   :  { %v62_v30 = vadd.f32 %v60_v29, %v55_v28 }
  0x48   :  { %63 = vst [vmem:[#allocation5] sm:$0xff] %v62_v30 }
  0x49   :  { %114 = shalt.err (!%p111_p9)
}
  0x4a   :  { %73 = dma.vmem_to_hbm [thread:$0]  %s71_s21, 128, %s164_s3, [#allocation4]  }
  0x4b   :  { %125 = dma.done.wait [#allocation4], 128  }
  0x4c   :  { %126 = vsyncadd [#allocation4], 4294967168 }
  0x4d   :  { %77 = vsyncpa [#allocation3], 1 }
  0x4e   :  { %78 = vsyncpa [#allocation4], 1 }

</bundles_post_ra>
